<compile_context>
chip_gen: v5e
topology: v5e:2x2
jax: 0.10.0
libtpu: 0.0.40
codegen_flags: <defaults>
</compile_context>

<pallas_src>
import jax
import jax.numpy as jnp
from jax.experimental import pallas as pl
from jax.experimental.pallas import tpu as pltpu

IN_FEATURES = 784
HIDDEN = 256
NUM_CLASSES = 10
N_PAD = 128          # lane-dense output / second GEMM N dim


def _round_up(n, m):
    return ((n + m - 1) // m) * m


def _batch_tile_cap():
    """128 on v5-class chips (128x128 MXU), 256 on v6e/v7x (2x256 MXU)."""
    try:
        kind = jax.devices()[0].device_kind.lower()
    except Exception:
        return 128
    if "v5" in kind:
        return 128
    return 256


def _choose_tile_b(B, cap):
    if B <= 8:
        return 8                       # single tiny step, no batch padding
    if B <= cap:
        return _round_up(B, 16)        # single step covering the whole batch
    # Multi-step: split into an even number of balanced, 16-aligned tiles so the
    # "parallel" batch axis has >= 2 steps and can shard across both v7x TCs.
    n_steps = max(2, pl.cdiv(B, cap))
    if n_steps % 2:
        n_steps += 1
    return _round_up(pl.cdiv(B, n_steps), 16)


def mlp_kernel(x_ref, w1_ref, b1_ref, w2_ref, b2_ref, o_ref):
    # x_ref: (TILE_B, 784) f32; w1_ref: (784, 256) bf16; b1_ref: (1, 256) f32
    # w2_ref: (256, 128) bf16;  b2_ref: (1, 128) f32;   o_ref: (TILE_B, 128) f32
    x = x_ref[...].astype(jnp.bfloat16)            # in-kernel cast (no wrapper pass)
    # hidden = sigmoid(x @ W1 + b1)   (bf16 MXU, f32 accumulate)
    h = jnp.dot(x, w1_ref[...], preferred_element_type=jnp.float32) + b1_ref[...]
    h = jax.lax.logistic(h)                        # nn.Sigmoid -> EUP
    # logits = h @ W2 + b2 ; padded W2 columns are zero and their bias is -1e30,
    # so the padded class lanes are already masked (no iota/where needed).
    logits = jnp.dot(h.astype(jnp.bfloat16), w2_ref[...],
                     preferred_element_type=jnp.float32) + b2_ref[...]
    m = jnp.max(logits, axis=-1, keepdims=True)
    e = jnp.exp(logits - m)
    denom = jnp.sum(e, axis=-1, keepdims=True)
    o_ref[...] = (e / denom).astype(o_ref.dtype)   # exact normalization


def mlp_forward(x, w1p, b1p, w2p, b2p):
    """x: (B, 784) f32.  w1p/b1p/w2p/b2p: prepped params from prepare_params()."""
    B = x.shape[0]
    cap = _batch_tile_cap()
    tile_b = _choose_tile_b(B, cap)
    B_pad = _round_up(B, tile_b)
    nb = B_pad // tile_b

    # only pad the batch dim, and only if needed (single-step small batches: no pad)
    x_p = x if B_pad == B else jnp.pad(x, ((0, B_pad - B), (0, 0)))

    cost = pl.CostEstimate(
        flops=2 * B_pad * (IN_FEATURES * HIDDEN + HIDDEN * N_PAD),
        transcendentals=B_pad * (HIDDEN + N_PAD),
        bytes_accessed=(IN_FEATURES * HIDDEN + HIDDEN * N_PAD) * 2   # bf16 weights
                       + (HIDDEN + N_PAD) * 4                        # f32 biases
                       + B_pad * IN_FEATURES * 4                     # f32 x in
                       + B_pad * N_PAD * 4,                          # f32 out
    )

    out = pl.pallas_call(
        mlp_kernel,
        out_shape=jax.ShapeDtypeStruct((B_pad, N_PAD), jnp.float32),
        grid=(nb,),
        in_specs=[
            pl.BlockSpec((tile_b, IN_FEATURES), lambda i: (i, 0)),   # x tile per step
            pl.BlockSpec((IN_FEATURES, HIDDEN), lambda i: (0, 0)),   # W1 resident
            pl.BlockSpec((1, HIDDEN), lambda i: (0, 0)),             # b1 resident
            pl.BlockSpec((HIDDEN, N_PAD), lambda i: (0, 0)),         # W2 resident
            pl.BlockSpec((1, N_PAD), lambda i: (0, 0)),              # b2 resident
        ],
        out_specs=pl.BlockSpec((tile_b, N_PAD), lambda i: (i, 0)),
        compiler_params=pltpu.CompilerParams(
            dimension_semantics=("parallel",),   # batch axis -> both v7x TensorCores
            vmem_limit_bytes=8 << 20,            # ~3 MiB footprint at tile_b=256
        ),
        cost_estimate=cost,
    )(x_p, w1p, b1p, w2p, b2p)

    return out[:B, :NUM_CLASSES]


def init_params(key):
    """Deterministic init mimicking nn.Linear's U(-1/sqrt(fan_in), 1/sqrt(fan_in)).
    Weights stored already transposed: (in_features, out_features)."""
    k1, k2, k3, k4 = jax.random.split(key, 4)
    lim1 = 1.0 / jnp.sqrt(jnp.float32(IN_FEATURES))
    lim2 = 1.0 / jnp.sqrt(jnp.float32(HIDDEN))
    w1 = jax.random.uniform(k1, (IN_FEATURES, HIDDEN), jnp.float32, -lim1, lim1)
    b1 = jax.random.uniform(k2, (1, HIDDEN), jnp.float32, -lim1, lim1)
    w2 = jax.random.uniform(k3, (HIDDEN, NUM_CLASSES), jnp.float32, -lim2, lim2)
    b2 = jax.random.uniform(k4, (1, NUM_CLASSES), jnp.float32, -lim2, lim2)
    return w1, b1, w2, b2


def prepare_params(w1, b1, w2, b2):
    """One-time host-side prep: cast weights to bf16, lane-pad W2/b2 to 128 classes,
    and bake the softmax padding mask into b2 (-1e30 in the padded lanes)."""
    w1p = w1.astype(jnp.bfloat16)                               # (784, 256), no K pad
    b1p = b1.astype(jnp.float32)                                # (1, 256)
    w2p = jnp.pad(w2, ((0, 0), (0, N_PAD - NUM_CLASSES))).astype(jnp.bfloat16)
    b2p = jnp.pad(b2.astype(jnp.float32), ((0, 0), (0, N_PAD - NUM_CLASSES)),
                  constant_values=-1e30)                        # mask baked into bias
    return w1p, b1p, w2p, b2p


if __name__ == "__main__":
    key = jax.random.PRNGKey(0)
    kx, kp = jax.random.split(key)
    batch = 8
    x = jax.random.uniform(kx, (batch, IN_FEATURES), jnp.float32)  # flattened 28x28
    w1, b1, w2, b2 = init_params(kp)
    w1p, b1p, w2p, b2p = prepare_params(w1, b1, w2, b2)

    out = jax.block_until_ready(mlp_forward(x, w1p, b1p, w2p, b2p))
    assert out.shape == (batch, NUM_CLASSES)

    # matched-precision reference (same bf16 casts / f32 accumulation as the kernel)
    x_bf, w1_bf, w2_bf = (a.astype(jnp.bfloat16) for a in (x, w1, w2))
    h_ref = jax.nn.sigmoid(
        jnp.dot(x_bf, w1_bf, preferred_element_type=jnp.float32) + b1)
    logits_ref = jnp.dot(h_ref.astype(jnp.bfloat16), w2_bf,
                         preferred_element_type=jnp.float32) + b2
    ref = jax.nn.softmax(logits_ref, axis=1)
    assert jnp.allclose(out, ref, atol=2e-3), "mismatch vs matched-precision reference"

    # exact softmax normalization (exact divide in the kernel)
    assert jnp.allclose(jnp.sum(out, axis=1), 1.0, atol=1e-4)

    # looser sanity vs full-f32 PyTorch-equivalent reference
    ref_f32 = jax.nn.softmax(jax.nn.sigmoid(x @ w1 + b1) @ w2 + b2, axis=1)
    assert jnp.allclose(out, ref_f32, atol=3e-2), "mismatch vs f32 reference"

    print("KERNEL_OK")
</pallas_src>

<mosaic_0001>
module attributes {stable_mosaic.version = 11 : i64} {
  func.func @mlp_kernel(%arg0: i32, %arg1: memref<8x784xf32, #tpu.memory_space<vmem>>, %arg2: memref<784x256xbf16, #tpu.memory_space<vmem>>, %arg3: memref<1x256xf32, #tpu.memory_space<vmem>>, %arg4: memref<256x128xbf16, #tpu.memory_space<vmem>>, %arg5: memref<1x128xf32, #tpu.memory_space<vmem>>, %arg6: memref<8x128xf32, #tpu.memory_space<vmem>>) attributes {dimension_semantics = [#tpu.dimension_semantics<parallel>], iteration_bounds = array<i64: 1>, scalar_prefetch = 0 : i64, scratch_operands = 0 : i64, tpu.core_type = #tpu.core_type<tc>, window_params = [{transform_indices = @transform_0, window_bounds = array<i64: 8, 784>}, {pipeline_mode = #tpu.pipeline_mode<synchronous>, transform_indices = @transform_1, window_bounds = array<i64: 784, 256>}, {pipeline_mode = #tpu.pipeline_mode<synchronous>, transform_indices = @transform_2, window_bounds = array<i64: 1, 256>}, {pipeline_mode = #tpu.pipeline_mode<synchronous>, transform_indices = @transform_3, window_bounds = array<i64: 256, 128>}, {pipeline_mode = #tpu.pipeline_mode<synchronous>, transform_indices = @transform_4, window_bounds = array<i64: 1, 128>}, {transform_indices = @transform_5, window_bounds = array<i64: 8, 128>}]} {
    %c0 = arith.constant 0 : index
    %c0_0 = arith.constant 0 : index
    %0 = vector.load %arg1[%c0, %c0_0] : memref<8x784xf32, #tpu.memory_space<vmem>>, vector<8x784xf32>
    %1 = arith.truncf %0 : vector<8x784xf32> to vector<8x784xbf16>
    %c0_1 = arith.constant 0 : index
    %c0_2 = arith.constant 0 : index
    %2 = vector.load %arg2[%c0_1, %c0_2] : memref<784x256xbf16, #tpu.memory_space<vmem>>, vector<784x256xbf16>
    %cst = arith.constant dense<0.000000e+00> : vector<8x256xf32>
    %3 = tpu.matmul %1, %2, %cst {dimension_numbers = #tpu.dot_dimension_numbers<[1], [0], [0], [1], [0, 0, 1, 1], [], []>} : vector<8x784xbf16>, vector<784x256xbf16>, vector<8x256xf32> -> vector<8x256xf32>
    %c0_3 = arith.constant 0 : index
    %c0_4 = arith.constant 0 : index
    %4 = vector.load %arg3[%c0_3, %c0_4] : memref<1x256xf32, #tpu.memory_space<vmem>>, vector<1x256xf32>
    %5 = vector.broadcast %4 : vector<1x256xf32> to vector<8x256xf32>
    %6 = arith.addf %3, %5 : vector<8x256xf32>
    %7 = arith.negf %6 : vector<8x256xf32>
    %8 = math.exp %7 : vector<8x256xf32>
    %cst_5 = arith.constant 1.000000e+00 : f32
    %9 = vector.broadcast %cst_5 : f32 to vector<8x256xf32>
    %10 = arith.addf %9, %8 : vector<8x256xf32>
    %11 = arith.divf %9, %10 : vector<8x256xf32>
    %12 = arith.truncf %11 : vector<8x256xf32> to vector<8x256xbf16>
    %c0_6 = arith.constant 0 : index
    %c0_7 = arith.constant 0 : index
    %13 = vector.load %arg4[%c0_6, %c0_7] : memref<256x128xbf16, #tpu.memory_space<vmem>>, vector<256x128xbf16>
    %cst_8 = arith.constant dense<0.000000e+00> : vector<8x128xf32>
    %14 = tpu.matmul %12, %13, %cst_8 {dimension_numbers = #tpu.dot_dimension_numbers<[1], [0], [0], [1], [0, 0, 1, 1], [], []>} : vector<8x256xbf16>, vector<256x128xbf16>, vector<8x128xf32> -> vector<8x128xf32>
    %c0_9 = arith.constant 0 : index
    %c0_10 = arith.constant 0 : index
    %15 = vector.load %arg5[%c0_9, %c0_10] : memref<1x128xf32, #tpu.memory_space<vmem>>, vector<1x128xf32>
    %16 = vector.broadcast %15 : vector<1x128xf32> to vector<8x128xf32>
    %17 = arith.addf %14, %16 : vector<8x128xf32>
    %cst_11 = arith.constant dense<0xFF800000> : vector<8xf32>
    %18 = vector.multi_reduction <maximumf>, %17, %cst_11 [1] : vector<8x128xf32> to vector<8xf32>
    %19 = vector.shape_cast %18 : vector<8xf32> to vector<8x1xf32>
    %20 = vector.broadcast %19 : vector<8x1xf32> to vector<8x128xf32>
    %21 = arith.subf %17, %20 : vector<8x128xf32>
    %22 = math.exp %21 : vector<8x128xf32>
    %cst_12 = arith.constant dense<0.000000e+00> : vector<8xf32>
    %23 = vector.multi_reduction <add>, %22, %cst_12 [1] : vector<8x128xf32> to vector<8xf32>
    %24 = vector.shape_cast %23 : vector<8xf32> to vector<8x1xf32>
    %25 = vector.broadcast %24 : vector<8x1xf32> to vector<8x128xf32>
    %26 = arith.divf %22, %25 : vector<8x128xf32>
    %c0_13 = arith.constant 0 : index
    %c0_14 = arith.constant 0 : index
    %27 = vector.load %arg6[%c0_13, %c0_14] : memref<8x128xf32, #tpu.memory_space<vmem>>, vector<8x128xf32>
    tpu.vector_store %arg6[%c0_13, %c0_14], %26 {strides = array<i32>} : memref<8x128xf32, #tpu.memory_space<vmem>>, vector<8x128xf32>,
    return
  }
  func.func @transform_0(%arg0: i32) -> (i32, i32) {
    %c0_i32 = arith.constant 0 : i32
    %c0_i32_0 = arith.constant 0 : i32
    return %arg0, %c0_i32 : i32, i32
  }
  func.func @transform_1(%arg0: i32) -> (i32, i32) {
    %c0_i32 = arith.constant 0 : i32
    %c0_i32_0 = arith.constant 0 : i32
    %c0_i32_1 = arith.constant 0 : i32
    return %c0_i32, %c0_i32_0 : i32, i32
  }
  func.func @transform_2(%arg0: i32) -> (i32, i32) {
    %c0_i32 = arith.constant 0 : i32
    %c0_i32_0 = arith.constant 0 : i32
    %c0_i32_1 = arith.constant 0 : i32
    return %c0_i32, %c0_i32_0 : i32, i32
  }
  func.func @transform_3(%arg0: i32) -> (i32, i32) {
    %c0_i32 = arith.constant 0 : i32
    %c0_i32_0 = arith.constant 0 : i32
    %c0_i32_1 = arith.constant 0 : i32
    return %c0_i32, %c0_i32_0 : i32, i32
  }
  func.func @transform_4(%arg0: i32) -> (i32, i32) {
    %c0_i32 = arith.constant 0 : i32
    %c0_i32_0 = arith.constant 0 : i32
    %c0_i32_1 = arith.constant 0 : i32
    return %c0_i32, %c0_i32_0 : i32, i32
  }
  func.func @transform_5(%arg0: i32) -> (i32, i32) {
    %c0_i32 = arith.constant 0 : i32
    %c0_i32_0 = arith.constant 0 : i32
    return %arg0, %c0_i32 : i32, i32
  }
}

</mosaic_0001>

<bundles_post_ra>
// kernel: tpu_custom_call.1
= control target key start
LH: loop header
LB: loop body
LE: loop exit
PB: predicated region body
PF: predicated region fallthrough
CT: control target
= control target key end

     0   :  { %10 = vsyncpa [#allocation3], 0  ;;  %s1926_s0 = inlined_call_operand.hbm [shape: f32[8,784], index: 0, kind: input, shape index: {}]   ;;  %s1927_s1 = inlined_call_operand.hbm [shape: bf16[784,256], index: 1, kind: input, shape index: {}]   ;;  %s1928_s2 = inlined_call_operand.hbm [shape: f32[1,256], index: 2, kind: input, shape index: {}]   ;;  %s1929_s3 = inlined_call_operand.hbm [shape: bf16[256,128], index: 3, kind: input, shape index: {}]   ;;  %s1930_s4 = inlined_call_operand.vmem [shape: f32[1,128], index: 4, kind: input, shape index: {}]   ;;  %s1931_s5 = inlined_call_operand.hbm [shape: f32[8,128], index: 5, kind: output, shape index: {}]  }
   0x1   :  { %11 = vsyncpa [#allocation6], 0 }
   0x2   :  { %12 = vsyncpa [#allocation9], 0  ;;  %s29_s20 = sshll.u32 %s1927_s1, 4  ;;  %s30_s20 = int_to_ptr.hbm [resolvable:$true] %s29_s20 }
   0x3   :  { %13 = vsyncpa [#allocation4], 0  ;;  %s1839_s21 = smov [#allocation5]   ;;  %s19_s25 = sshll.u32 %s1926_s0, 4  ;;  %s20_s25 = int_to_ptr.hbm [resolvable:$true] %s19_s25 }
   0x4   :  { %s31_s22 = sshll.u32 %s1839_s21, 4  ;;  %s1840_s26 = smov 128   ;;  %s32_s22 = int_to_ptr.vmem [resolvable:$true] %s31_s22 }
   0x5   :  { %s1841_s27 = smov 8   ;;  %s1842_s28 = smov [#allocation2]  }
   0x6   :  { %37 = dma.hbm_to_vmem [thread:$0]  %s30_s20, 12544, %s32_s22, [#allocation6], %s1840_s26, %s1840_s26, %s1841_s27  }
   0x7   :  { %s21_s29 = sshll.u32 %s1842_s28, 4  ;;  %s43_s7 = sshll.u32 %s1928_s2, 4  ;;  %s22_s29 = int_to_ptr.vmem [resolvable:$true] %s21_s29  ;;  %s44_s7 = int_to_ptr.hbm [resolvable:$true] %s43_s7 }
   0x8   :  { %24 = dma.hbm_to_vmem [thread:$0]  %s20_s25, 896, %s22_s29, [#allocation3]  }
   0x9   :  { %s53_s9 = sshll.u32 %s1929_s3, 4  ;;  %s1843_s10 = smov [#allocation7]   ;;  %s54_s9 = int_to_ptr.hbm [resolvable:$true] %s53_s9 }
   0xa   :  { %s45_s11 = sshll.u32 %s1843_s10, 4  ;;  %s1844_s0 = smov [#allocation8]   ;;  %s46_s11 = int_to_ptr.vmem [resolvable:$true] %s45_s11 }
   0xb   :  { %48 = dma.hbm_to_vmem [thread:$0]  %s44_s7, 32, %s46_s11, [#allocation6]  }
   0xc   :  { %s55_s12 = sshll.u32 %s1844_s0, 4  ;;  %s1845_s13 = smov 64   ;;  %s56_s12 = int_to_ptr.vmem [resolvable:$true] %s55_s12 }
   0xd   :  { %s1846_s14 = smov 4  }
   0xe   :  { %61 = dma.hbm_to_vmem [thread:$0]  %s54_s9, 2048, %s56_s12, [#allocation9], %s1845_s13, %s1845_s13, %s1846_s14  }
   0xf   :  { %1831 = dma.done.wait [#allocation3], 896  }
  0x10   :  { %1832 = vsyncadd [#allocation3], 4294966400 }
  0x11   :  { %1833 = dma.done.wait [#allocation6], 12576  }
  0x12   :  { %1834 = vsyncadd [#allocation6], 4294954720 }
  0x13   :  { %1835 = dma.done.wait [#allocation9], 2048  }
  0x14   :  { %1836 = vsyncadd [#allocation9], 4294965248  ;;  %v1173_v0 = vld [vmem:[#allocation5 + $0x70] sm:$0xf]  ;;  %v1590_v1 = vld [vmem:[#allocation5 + $0x74] sm:$0xf0] }
  0x15   :  { %v1301_v2 = vld [vmem:[#allocation5 + $0x170] sm:$0xf]  ;;  %v1174_v3 = vor.u32 %v1590_v1, %v1173_v0  ;;  %v1622_v4 = vld [vmem:[#allocation5 + $0x174] sm:$0xf0]  ;;  %v1165_v11 = vld [vmem:[#allocation5 + $0x60] sm:$0xf] }
  0x16   :  { %v1365_v5 = vld [vmem:[#allocation5 + $0x1f0] sm:$0xf]  ;;  %v1638_v6 = vld [vmem:[#allocation5 + $0x1f4] sm:$0xf0]  ;;  %v1302_v7 = vor.u32 %v1622_v4, %v1301_v2  ;;  %v1588_v13 = vld [vmem:[#allocation5 + $0x64] sm:$0xf0] }
  0x17   :  { %v1366_v8 = vor.u32 %v1638_v6, %v1365_v5  ;;  %v1237_v9 = vld [vmem:[#allocation5 + $0xf0] sm:$0xf]  ;;  %v1606_v10 = vld [vmem:[#allocation5 + $0xf4] sm:$0xf0]  ;;  %693 = vmatpush.bf16.msra.mxu0 %v1174_v3  ;;  %v1293_v14 = vld [vmem:[#allocation5 + $0x160] sm:$0xf]  ;;  %v1166_v16 = vor.u32 %v1588_v13, %v1165_v11 }
  0x18   :  { %v1238_v12 = vor.u32 %v1606_v10, %v1237_v9  ;;  %v1620_v15 = vld [vmem:[#allocation5 + $0x164] sm:$0xf0]  ;;  %719 = vmatpush.bf16.msra.mxu2 %v1302_v7  ;;  %v1357_v18 = vld [vmem:[#allocation5 + $0x1e0] sm:$0xf]  ;;  %v1157_v23 = vld [vmem:[#allocation5 + $0x50] sm:$0xf] }
  0x19   :  { %732 = vmatpush.bf16.msra.mxu3 %v1366_v8  ;;  %v1294_v17 = vor.u32 %v1620_v15, %v1293_v14  ;;  %v1636_v19 = vld [vmem:[#allocation5 + $0x1e4] sm:$0xf0]  ;;  %v1229_v20 = vld [vmem:[#allocation5 + $0xe0] sm:$0xf]  ;;  %v1586_v24 = vld [vmem:[#allocation5 + $0x54] sm:$0xf0] }
  0x1a   :  { %706 = vmatpush.bf16.msra.mxu1 %v1238_v12  ;;  %v1358_v21 = vor.u32 %v1636_v19, %v1357_v18  ;;  %v1604_v22 = vld [vmem:[#allocation5 + $0xe4] sm:$0xf0]  ;;  %v1285_v26 = vld [vmem:[#allocation5 + $0x150] sm:$0xf]  ;;  %v1618_v27 = vld [vmem:[#allocation5 + $0x154] sm:$0xf0]  ;;  %v1158_v29 = vor.u32 %v1586_v24, %v1157_v23 }
  0x1b   :  { %v1230_v25 = vor.u32 %v1604_v22, %v1229_v20  ;;  %v1349_v28 = vld [vmem:[#allocation5 + $0x1d0] sm:$0xf]  ;;  %694 = vmatpush.bf16.msra.mxu0 %v1166_v16  ;;  %v1634_v30 = vld [vmem:[#allocation5 + $0x1d4] sm:$0xf0]  ;;  %v1286_v33 = vor.u32 %v1618_v27, %v1285_v26  ;;  %v1149_v35 = vld [vmem:[#allocation5 + $0x40] sm:$0xf] }
  0x1c   :  { %v1221_v31 = vld [vmem:[#allocation5 + $0xd0] sm:$0xf]  ;;  %v1602_v32 = vld [vmem:[#allocation5 + $0xd4] sm:$0xf0]  ;;  %720 = vmatpush.bf16.msra.mxu2 %v1294_v17  ;;  %v1350_v34 = vor.u32 %v1634_v30, %v1349_v28  ;;  %v1584_v36 = vld [vmem:[#allocation5 + $0x44] sm:$0xf0] }
  0x1d   :  { %733 = vmatpush.bf16.msra.mxu3 %v1358_v21  ;;  %v1277_v37 = vld [vmem:[#allocation5 + $0x140] sm:$0xf]  ;;  %v1222_v38 = vor.u32 %v1602_v32, %v1221_v31  ;;  %v1616_v39 = vld [vmem:[#allocation5 + $0x144] sm:$0xf0]  ;;  %v1150_v44 = vor.u32 %v1584_v36, %v1149_v35  ;;  %v1141_v47 = vld [vmem:[#allocation5 + $0x30] sm:$0xf] }
  0x1e   :  { %707 = vmatpush.bf16.msra.mxu1 %v1230_v25  ;;  %v1341_v40 = vld [vmem:[#allocation5 + $0x1c0] sm:$0xf]  ;;  %v1632_v41 = vld [vmem:[#allocation5 + $0x1c4] sm:$0xf0]  ;;  %v1278_v45 = vor.u32 %v1616_v39, %v1277_v37  ;;  %v1582_v48 = vld [vmem:[#allocation5 + $0x34] sm:$0xf0] }
  0x1f   :  { %v1213_v42 = vld [vmem:[#allocation5 + $0xc0] sm:$0xf]  ;;  %v1600_v43 = vld [vmem:[#allocation5 + $0xc4] sm:$0xf0]  ;;  %695 = vmatpush.bf16.msra.mxu0 %v1158_v29  ;;  %v1342_v46 = vor.u32 %v1632_v41, %v1341_v40  ;;  %v1269_v49 = vld [vmem:[#allocation5 + $0x130] sm:$0xf]  ;;  %v1142_v56 = vor.u32 %v1582_v48, %v1141_v47 }
  0x20   :  { %721 = vmatpush.bf16.msra.mxu2 %v1286_v33  ;;  %v1214_v50 = vor.u32 %v1600_v43, %v1213_v42  ;;  %v1614_v51 = vld [vmem:[#allocation5 + $0x134] sm:$0xf0]  ;;  %v1333_v52 = vld [vmem:[#allocation5 + $0x1b0] sm:$0xf]  ;;  %v1133_v59 = vld [vmem:[#allocation5 + $0x20] sm:$0xf] }
  0x21   :  { %734 = vmatpush.bf16.msra.mxu3 %v1350_v34  ;;  %v1630_v53 = vld [vmem:[#allocation5 + $0x1b4] sm:$0xf0]  ;;  %v1205_v54 = vld [vmem:[#allocation5 + $0xb0] sm:$0xf]  ;;  %v1270_v57 = vor.u32 %v1614_v51, %v1269_v49  ;;  %v1580_v60 = vld [vmem:[#allocation5 + $0x24] sm:$0xf0] }
  0x22   :  { %708 = vmatpush.bf16.msra.mxu1 %v1222_v38  ;;  %v1598_v55 = vld [vmem:[#allocation5 + $0xb4] sm:$0xf0]  ;;  %v1334_v58 = vor.u32 %v1630_v53, %v1333_v52  ;;  %v1261_v61 = vld [vmem:[#allocation5 + $0x120] sm:$0xf]  ;;  %v1612_v63 = vld [vmem:[#allocation5 + $0x124] sm:$0xf0]  ;;  %v1134_v4 = vor.u32 %v1580_v60, %v1133_v59 }
  0x23   :  { %696 = vmatpush.bf16.msra.mxu0 %v1150_v44  ;;  %v1206_v62 = vor.u32 %v1598_v55, %v1205_v54  ;;  %v1325_v0 = vld [vmem:[#allocation5 + $0x1a0] sm:$0xf]  ;;  %v1628_v1 = vld [vmem:[#allocation5 + $0x1a4] sm:$0xf0]  ;;  %v1262_v5 = vor.u32 %v1612_v63, %v1261_v61  ;;  %v1125_v7 = vld [vmem:[#allocation5 + $0x10] sm:$0xf] }
  0x24   :  { %722 = vmatpush.bf16.msra.mxu2 %v1278_v45  ;;  %v1197_v2 = vld [vmem:[#allocation5 + $0xa0] sm:$0xf]  ;;  %v1596_v3 = vld [vmem:[#allocation5 + $0xa4] sm:$0xf0]  ;;  %v1326_v6 = vor.u32 %v1628_v1, %v1325_v0  ;;  %v1578_v8 = vld [vmem:[#allocation5 + $0x14] sm:$0xf0] }
  0x25   :  { %735 = vmatpush.bf16.msra.mxu3 %v1342_v46  ;;  %v1253_v9 = vld [vmem:[#allocation5 + $0x110] sm:$0xf]  ;;  %v1198_v10 = vor.u32 %v1596_v3, %v1197_v2  ;;  %v1610_v11 = vld [vmem:[#allocation5 + $0x114] sm:$0xf0]  ;;  %v1126_v16 = vor.u32 %v1578_v8, %v1125_v7  ;;  %v1117_v17 = vld [vmem:[#allocation5] sm:$0xf] }
  0x26   :  { %709 = vmatpush.bf16.msra.mxu1 %v1214_v50  ;;  %v1317_v12 = vld [vmem:[#allocation5 + $0x190] sm:$0xf]  ;;  %v1626_v13 = vld [vmem:[#allocation5 + $0x194] sm:$0xf0]  ;;  %v1576_v18 = vld [vmem:[#allocation5 + $0x4] sm:$0xf0]  ;;  %v1254_v20 = vor.u32 %v1610_v11, %v1253_v9 }
  0x27   :  { %697 = vmatpush.bf16.msra.mxu0 %v1142_v56  ;;  %v1189_v14 = vld [vmem:[#allocation5 + $0x90] sm:$0xf]  ;;  %v1594_v15 = vld [vmem:[#allocation5 + $0x94] sm:$0xf0]  ;;  %v1245_v19 = vld [vmem:[#allocation5 + $0x100] sm:$0xf]  ;;  %v1318_v21 = vor.u32 %v1626_v13, %v1317_v12  ;;  %v1118_v32 = vor.u32 %v1576_v18, %v1117_v17 }
  0x28   :  { %723 = vmatpush.bf16.msra.mxu2 %v1270_v57  ;;  %v1608_v22 = vld [vmem:[#allocation5 + $0x104] sm:$0xf0]  ;;  %v1309_v23 = vld [vmem:[#allocation5 + $0x180] sm:$0xf]  ;;  %v1190_v25 = vor.u32 %v1594_v15, %v1189_v14  ;;  %v1429_v26 = vld [vmem:[#allocation5 + $0x270] sm:$0xf] }
  0x29   :  { %736 = vmatpush.bf16.msra.mxu3 %v1334_v58  ;;  %v1624_v24 = vld [vmem:[#allocation5 + $0x184] sm:$0xf0]  ;;  %v1654_v27 = vld [vmem:[#allocation5 + $0x274] sm:$0xf0]  ;;  %v1589_v28 = vld [vmem:[#allocation5 + $0x74] sm:$0xf]  ;;  %v1246_v36 = vor.u32 %v1608_v22, %v1245_v19 }
  0x2a   :  { %710 = vmatpush.bf16.msra.mxu1 %v1206_v62  ;;  %v1175_v29 = vld [vmem:[#allocation5 + $0x78] sm:$0xf0]  ;;  %v1181_v30 = vld [vmem:[#allocation5 + $0x80] sm:$0xf]  ;;  %v1592_v31 = vld [vmem:[#allocation5 + $0x84] sm:$0xf0]  ;;  %v1310_v37 = vor.u32 %v1624_v24, %v1309_v23  ;;  %v1430_v41 = vor.u32 %v1654_v27, %v1429_v26 }
  0x2b   :  { %698 = vmatpush.bf16.msra.mxu0 %v1134_v4  ;;  %v83_v33 = vld [vmem:[#allocation2 + $0x10] sm:$0xff]  ;;  %v1501_v34 = vld [vmem:[#allocation5 + $0x300] sm:$0xf]  ;;  %v1672_v35 = vld [vmem:[#allocation5 + $0x304] sm:$0xf0]  ;;  %v1178_v42 = vor.u32 %v1589_v28, %v1175_v29  ;;  %v1182_v46 = vor.u32 %v1592_v31, %v1181_v30  ;;  %vm689_vm0 = vcmask 130048  }
  0x2c   :  { %724 = vmatpush.bf16.msra.mxu2 %v1262_v5  ;;  %v1493_v38 = vld [vmem:[#allocation5 + $0x2f0] sm:$0xf]  ;;  %v1670_v39 = vld [vmem:[#allocation5 + $0x2f4] sm:$0xf0]  ;;  %v1605_v40 = vld [vmem:[#allocation5 + $0xf4] sm:$0xf]  ;;  %v1502_v47 = vor.u32 %v1672_v35, %v1501_v34  ;;  %v1890_v51 = vpack.c.bf16 %v83_v33, %v83_v33 }
  0x2d   :  { %737 = vmatpush.bf16.msra.mxu3 %v1326_v6  ;;  %v1239_v43 = vld [vmem:[#allocation5 + $0xf8] sm:$0xf0]  ;;  %v1421_v44 = vld [vmem:[#allocation5 + $0x260] sm:$0xf]  ;;  %v81_v45 = vld [vmem:[#allocation2] sm:$0xff]  ;;  %v1494_v52 = vor.u32 %v1670_v39, %v1493_v38  ;;  %s1103_s18 = sshll.u32 %s1931_s5, 4  ;;  %s1104_s18 = int_to_ptr.hbm [resolvable:$true] %s1103_s18 }
  0x2e   :  { %711 = vmatpush.bf16.msra.mxu1 %v1198_v10  ;;  %v1652_v48 = vld [vmem:[#allocation5 + $0x264] sm:$0xf0]  ;;  %v1587_v49 = vld [vmem:[#allocation5 + $0x64] sm:$0xf]  ;;  %v1167_v50 = vld [vmem:[#allocation5 + $0x68] sm:$0xf0]  ;;  %v1242_v55 = vor.u32 %v1605_v40, %v1239_v43  ;;  %v1892_v58 = vpack.c.bf16 %v81_v45, %v81_v45 }
  0x2f   :  { %699 = vmatpush.bf16.msra.mxu0 %v1126_v16  ;;  %v84_v53 = vld [vmem:[#allocation2 + $0x18] sm:$0xff]  ;;  %v82_v54 = vld [vmem:[#allocation2 + $0x8] sm:$0xff]  ;;  %v1668_v57 = vld [vmem:[#allocation5 + $0x2e4] sm:$0xf0]  ;;  %v1422_v59 = vor.u32 %v1652_v48, %v1421_v44  ;;  %v1170_v60 = vor.u32 %v1587_v49, %v1167_v50 }
  0x30   :  { %725 = vmatpush.bf16.msra.mxu2 %v1254_v20  ;;  %v1485_v56 = vld [vmem:[#allocation5 + $0x2e0] sm:$0xf]  ;;  %v1603_v61 = vld [vmem:[#allocation5 + $0xe4] sm:$0xf]  ;;  %v1231_v62 = vld [vmem:[#allocation5 + $0xe8] sm:$0xf0]  ;;  %v1894_v3 = vpack.c.bf16 %v84_v53, %v84_v53  ;;  %v1896_v4 = vpack.c.bf16 %v82_v54, %v82_v54 }
  0x31   :  { %738 = vmatpush.bf16.msra.mxu3 %v1318_v21  ;;  %v1413_v63 = vld [vmem:[#allocation5 + $0x250] sm:$0xf]  ;;  %v1650_v0 = vld [vmem:[#allocation5 + $0x254] sm:$0xf0]  ;;  %v1585_v1 = vld [vmem:[#allocation5 + $0x54] sm:$0xf]  ;;  %v1486_v5 = vor.u32 %v1668_v57, %v1485_v56  ;;  %v1234_v6 = vor.u32 %v1603_v61, %v1231_v62 }
  0x32   :  { %712 = vmatpush.bf16.msra.mxu1 %v1190_v25  ;;  %v1159_v2 = vld [vmem:[#allocation5 + $0x58] sm:$0xf0]  ;;  %v1477_v7 = vld [vmem:[#allocation5 + $0x2d0] sm:$0xf]  ;;  %v1666_v8 = vld [vmem:[#allocation5 + $0x2d4] sm:$0xf0]  ;;  %v1414_v9 = vor.u32 %v1650_v0, %v1413_v63 }
  0x33   :  { %700 = vmatpush.bf16.msra.mxu0 %v1118_v32  ;;  %v1162_v10 = vor.u32 %v1585_v1, %v1159_v2  ;;  %v1601_v11 = vld [vmem:[#allocation5 + $0xd4] sm:$0xf]  ;;  %v1223_v12 = vld [vmem:[#allocation5 + $0xd8] sm:$0xf0]  ;;  %v1405_v13 = vld [vmem:[#allocation5 + $0x240] sm:$0xf]  ;;  %v1478_v17 = vor.u32 %v1666_v8, %v1477_v7 }
  0x34   :  { %726 = vmatpush.bf16.msra.mxu2 %v1246_v36  ;;  %v1648_v14 = vld [vmem:[#allocation5 + $0x244] sm:$0xf0]  ;;  %v1583_v15 = vld [vmem:[#allocation5 + $0x44] sm:$0xf]  ;;  %v1151_v16 = vld [vmem:[#allocation5 + $0x48] sm:$0xf0]  ;;  %v1226_v18 = vor.u32 %v1601_v11, %v1223_v12 }
  0x35   :  { %739 = vmatpush.bf16.msra.mxu3 %v1310_v37  ;;  %v1469_v19 = vld [vmem:[#allocation5 + $0x2c0] sm:$0xf]  ;;  %v1664_v20 = vld [vmem:[#allocation5 + $0x2c4] sm:$0xf0]  ;;  %v1406_v21 = vor.u32 %v1648_v14, %v1405_v13  ;;  %v1154_v22 = vor.u32 %v1583_v15, %v1151_v16  ;;  %v1599_v23 = vld [vmem:[#allocation5 + $0xc4] sm:$0xf] }
  0x36   :  { %713 = vmatpush.bf16.msra.mxu1 %v1182_v46  ;;  %701 = vmatmul.bf16.vlgmr.msra.gmra.mxu0 %v1892_v58  ;;  %v1215_v24 = vld [vmem:[#allocation5 + $0xc8] sm:$0xf0]  ;;  %v1397_v25 = vld [vmem:[#allocation5 + $0x230] sm:$0xf]  ;;  %v1646_v26 = vld [vmem:[#allocation5 + $0x234] sm:$0xf0]  ;;  %v1470_v29 = vor.u32 %v1664_v20, %v1469_v19 }
  0x37   :  { %745 = vmatpush.bf16.msrb.mxu0 %v1430_v41  ;;  %727 = vmatmul.bf16.vlgmr.msra.gmra.mxu2 %v1890_v51  ;;  %v1581_v27 = vld [vmem:[#allocation5 + $0x34] sm:$0xf]  ;;  %v1143_v28 = vld [vmem:[#allocation5 + $0x38] sm:$0xf0]  ;;  %v1218_v30 = vor.u32 %v1599_v23, %v1215_v24  ;;  %v1461_v31 = vld [vmem:[#allocation5 + $0x2b0] sm:$0xf]  ;;  %v1398_v34 = vor.u32 %v1646_v26, %v1397_v25 }
  0x38   :  { %778 = vmatpush.bf16.msrb.mxu2 %v1502_v47  ;;  %740 = vmatmul.bf16.vlgmr.msra.gmra.mxu3 %v1894_v3  ;;  %v1662_v32 = vld [vmem:[#allocation5 + $0x2b4] sm:$0xf0]  ;;  %v1146_v35 = vor.u32 %v1581_v27, %v1143_v28  ;;  %v1597_v36 = vld [vmem:[#allocation5 + $0xb4] sm:$0xf]  ;;  %v1207_v37 = vld [vmem:[#allocation5 + $0xb8] sm:$0xf0] }
  0x39   :  { %784 = vmatpush.bf16.msrb.mxu3 %v1178_v42  ;;  %714 = vmatmul.bf16.vlgmr.msra.gmra.mxu1 %v1896_v4  ;;  %v87_v33 = vld [vmem:[#allocation2 + $0x30] sm:$0xff]  ;;  %v1389_v38 = vld [vmem:[#allocation5 + $0x220] sm:$0xf]  ;;  %v1644_v39 = vld [vmem:[#allocation5 + $0x224] sm:$0xf0]  ;;  %v1462_v42 = vor.u32 %v1662_v32, %v1461_v31  ;;  %v1210_v44 = vor.u32 %v1597_v36, %v1207_v37 }
  0x3a   :  { %758 = vmatpush.bf16.msrb.mxu1 %v1494_v52  ;;  %v1579_v40 = vld [vmem:[#allocation5 + $0x24] sm:$0xf]  ;;  %v1135_v41 = vld [vmem:[#allocation5 + $0x28] sm:$0xf0]  ;;  %v1902_v43 = vpack.c.bf16 %v87_v33, %v87_v33  ;;  %v1453_v45 = vld [vmem:[#allocation5 + $0x2a0] sm:$0xf]  ;;  %v1390_v47 = vor.u32 %v1644_v39, %v1389_v38 }
  0x3b   :  { %746 = vmatpush.bf16.msrb.mxu0 %v1422_v59  ;;  %v1660_v46 = vld [vmem:[#allocation5 + $0x2a4] sm:$0xf0]  ;;  %v1138_v48 = vor.u32 %v1579_v40, %v1135_v41  ;;  %v1595_v49 = vld [vmem:[#allocation5 + $0xa4] sm:$0xf]  ;;  %v1199_v50 = vld [vmem:[#allocation5 + $0xa8] sm:$0xf0] }
  0x3c   :  { %797 = vmatpush.bf16.msra.mxu2 %v1242_v55  ;;  %v1381_v52 = vld [vmem:[#allocation5 + $0x210] sm:$0xf]  ;;  %v1642_v53 = vld [vmem:[#allocation5 + $0x214] sm:$0xf0]  ;;  %v1577_v54 = vld [vmem:[#allocation5 + $0x14] sm:$0xf]  ;;  %v1454_v56 = vor.u32 %v1660_v46, %v1453_v45  ;;  %v1202_v57 = vor.u32 %v1595_v49, %v1199_v50 }
  0x3d   :  { %785 = vmatpush.bf16.msrb.mxu3 %v1170_v60  ;;  %v1127_v55 = vld [vmem:[#allocation5 + $0x18] sm:$0xf0]  ;;  %v1445_v59 = vld [vmem:[#allocation5 + $0x290] sm:$0xf]  ;;  %v1658_v60 = vld [vmem:[#allocation5 + $0x294] sm:$0xf0]  ;;  %v1382_v62 = vor.u32 %v1642_v53, %v1381_v52 }
  0x3e   :  { %759 = vmatpush.bf16.msrb.mxu1 %v1486_v5  ;;  %v1593_v61 = vld [vmem:[#allocation5 + $0x94] sm:$0xf]  ;;  %v1130_v63 = vor.u32 %v1577_v54, %v1127_v55  ;;  %v1191_v0 = vld [vmem:[#allocation5 + $0x98] sm:$0xf0]  ;;  %v1373_v1 = vld [vmem:[#allocation5 + $0x200] sm:$0xf]  ;;  %v1446_v8 = vor.u32 %v1658_v60, %v1445_v59 }
  0x3f   :  { %747 = vmatpush.bf16.msrb.mxu0 %v1414_v9  ;;  %v1640_v2 = vld [vmem:[#allocation5 + $0x204] sm:$0xf0]  ;;  %v1575_v5 = vld [vmem:[#allocation5 + $0x4] sm:$0xf]  ;;  %v1621_v7 = vld [vmem:[#allocation5 + $0x174] sm:$0xf]  ;;  %v1194_v12 = vor.u32 %v1593_v61, %v1191_v0 }
  0x40   :  { %798 = vmatpush.bf16.msra.mxu2 %v1234_v6  ;;  %v1119_v6 = vld [vmem:[#allocation5 + $0x8] sm:$0xf0]  ;;  %v1303_v9 = vld [vmem:[#allocation5 + $0x178] sm:$0xf0]  ;;  %v1437_v13 = vld [vmem:[#allocation5 + $0x280] sm:$0xf]  ;;  %v1374_v16 = vor.u32 %v1640_v2, %v1373_v1 }
  0x41   :  { %786 = vmatpush.bf16.msrb.mxu3 %v1162_v10  ;;  %v1653_v10 = vld [vmem:[#allocation5 + $0x274] sm:$0xf]  ;;  %v1431_v11 = vld [vmem:[#allocation5 + $0x278] sm:$0xf0]  ;;  %v1656_v14 = vld [vmem:[#allocation5 + $0x284] sm:$0xf0] }
  0x42   :  { %760 = vmatpush.bf16.msrb.mxu1 %v1478_v17  ;;  %v85_v15 = vld [vmem:[#allocation2 + $0x20] sm:$0xff]  ;;  %v1122_v17 = vor.u32 %v1575_v5, %v1119_v6  ;;  %v1637_v20 = vld [vmem:[#allocation5 + $0x1f4] sm:$0xf]  ;;  %v1367_v23 = vld [vmem:[#allocation5 + $0x1f8] sm:$0xf0]  ;;  %v1438_v26 = vor.u32 %v1656_v14, %v1437_v13 }
  0x43   :  { %748 = vmatpush.bf16.msrb.mxu0 %v1406_v21  ;;  %v1183_v19 = vld [vmem:[#allocation5 + $0x88] sm:$0xf0]  ;;  %v1306_v21 = vor.u32 %v1621_v7, %v1303_v9  ;;  %v1669_v24 = vld [vmem:[#allocation5 + $0x2f4] sm:$0xf]  ;;  %v1495_v25 = vld [vmem:[#allocation5 + $0x2f8] sm:$0xf0] }
  0x44   :  { %799 = vmatpush.bf16.msra.mxu2 %v1226_v18  ;;  %v1591_v18 = vld [vmem:[#allocation5 + $0x84] sm:$0xf]  ;;  %v86_v27 = vld [vmem:[#allocation2 + $0x28] sm:$0xff]  ;;  %v1423_v33 = vld [vmem:[#allocation5 + $0x268] sm:$0xf0] }
  0x45   :  { %787 = vmatpush.bf16.msrb.mxu3 %v1154_v22  ;;  %v1434_v22 = vor.u32 %v1653_v10, %v1431_v11  ;;  %v1619_v28 = vld [vmem:[#allocation5 + $0x164] sm:$0xf]  ;;  %v1186_v31 = vor.u32 %v1591_v18, %v1183_v19  ;;  %v1908_v37 = vpack.c.bf16 %v86_v27, %v86_v27  ;;  %v1359_v39 = vld [vmem:[#allocation5 + $0x1e8] sm:$0xf0]  ;;  %v1287_v45 = vld [vmem:[#allocation5 + $0x158] sm:$0xf0] }
  0x46   :  { %761 = vmatpush.bf16.msrb.mxu1 %v1470_v29  ;;  %v1295_v29 = vld [vmem:[#allocation5 + $0x168] sm:$0xf0]  ;;  %v1651_v32 = vld [vmem:[#allocation5 + $0x264] sm:$0xf]  ;;  %v1649_v46 = vld [vmem:[#allocation5 + $0x254] sm:$0xf] }
  0x47   :  { %749 = vmatpush.bf16.msrb.mxu0 %v1398_v34  ;;  %1507 = vmatmul.msk.bf16.vlgmr.msrb.gmra.mxu2 %vm689_vm0, %v1902_v43  ;;  %v1370_v34 = vor.u32 %v1637_v20, %v1367_v23  ;;  %v1635_v36 = vld [vmem:[#allocation5 + $0x1e4] sm:$0xf]  ;;  %v1298_v38 = vor.u32 %v1619_v28, %v1295_v29  ;;  %v1487_v41 = vld [vmem:[#allocation5 + $0x2e8] sm:$0xf0]  ;;  %v1633_v50 = vld [vmem:[#allocation5 + $0x1d4] sm:$0xf] }
  0x48   :  { %800 = vmatpush.bf16.msra.mxu2 %v1218_v30  ;;  %v1906_v30 = vpack.c.bf16 %v85_v15, %v85_v15  ;;  %v1667_v40 = vld [vmem:[#allocation5 + $0x2e4] sm:$0xf]  ;;  %v1351_v53 = vld [vmem:[#allocation5 + $0x1d8] sm:$0xf0]  ;;  %v1665_v54 = vld [vmem:[#allocation5 + $0x2d4] sm:$0xf] }
  0x49   :  { %788 = vmatpush.bf16.msrb.mxu3 %v1146_v35  ;;  %v1498_v35 = vor.u32 %v1669_v24, %v1495_v25  ;;  %v1490_v49 = vor.u32 %v1667_v40, %v1487_v41  ;;  %v1479_v55 = vld [vmem:[#allocation5 + $0x2d8] sm:$0xf0]  ;;  %v1279_v59 = vld [vmem:[#allocation5 + $0x148] sm:$0xf0]  ;;  %v1647_v60 = vld [vmem:[#allocation5 + $0x244] sm:$0xf] }
  0x4a   :  { %762 = vmatpush.bf16.msrb.mxu1 %v1462_v42  ;;  %v1426_v42 = vor.u32 %v1651_v32, %v1423_v33  ;;  %v1407_v61 = vld [vmem:[#allocation5 + $0x248] sm:$0xf0]  ;;  %v1631_v0 = vld [vmem:[#allocation5 + $0x1c4] sm:$0xf]  ;;  %v1271_v9 = vld [vmem:[#allocation5 + $0x138] sm:$0xf0] }
  0x4b   :  { %750 = vmatpush.bf16.msrb.mxu0 %v1390_v47  ;;  %v1415_v47 = vld [vmem:[#allocation5 + $0x258] sm:$0xf0]  ;;  %v1343_v2 = vld [vmem:[#allocation5 + $0x1c8] sm:$0xf0]  ;;  %v1663_v5 = vld [vmem:[#allocation5 + $0x2c4] sm:$0xf]  ;;  %v1410_v7 = vor.u32 %v1647_v60, %v1407_v61 }
  0x4c   :  { %801 = vmatpush.bf16.msra.mxu2 %v1210_v44  ;;  %v1617_v44 = vld [vmem:[#allocation5 + $0x154] sm:$0xf]  ;;  %v1471_v6 = vld [vmem:[#allocation5 + $0x2c8] sm:$0xf0]  ;;  %v1346_v11 = vor.u32 %v1631_v0, %v1343_v2  ;;  %v1335_v14 = vld [vmem:[#allocation5 + $0x1b8] sm:$0xf0] }
  0x4d   :  { %789 = vmatpush.bf16.msrb.mxu3 %v1138_v48  ;;  %v1362_v48 = vor.u32 %v1635_v36, %v1359_v39  ;;  %v1290_v52 = vor.u32 %v1617_v44, %v1287_v45  ;;  %v1645_v10 = vld [vmem:[#allocation5 + $0x234] sm:$0xf]  ;;  %v1611_v18 = vld [vmem:[#allocation5 + $0x124] sm:$0xf]  ;;  %v1263_v19 = vld [vmem:[#allocation5 + $0x128] sm:$0xf0] }
  0x4e   :  { %763 = vmatpush.bf16.msrb.mxu1 %v1454_v56  ;;  %v1418_v56 = vor.u32 %v1649_v46, %v1415_v47  ;;  %v1661_v15 = vld [vmem:[#allocation5 + $0x2b4] sm:$0xf]  ;;  %v1643_v20 = vld [vmem:[#allocation5 + $0x224] sm:$0xf]  ;;  %v1266_v25 = vor.u32 %v1611_v18, %v1263_v19  ;;  %v1455_v28 = vld [vmem:[#allocation5 + $0x2a8] sm:$0xf0] }
  0x4f   :  { %751 = vmatpush.bf16.msrb.mxu0 %v1382_v62  ;;  %v1354_v62 = vor.u32 %v1633_v50, %v1351_v53  ;;  %v1627_v24 = vld [vmem:[#allocation5 + $0x1a4] sm:$0xf]  ;;  %v1255_v32 = vld [vmem:[#allocation5 + $0x118] sm:$0xf0]  ;;  %v1641_v33 = vld [vmem:[#allocation5 + $0x214] sm:$0xf] }
  0x50   :  { %802 = vmatpush.bf16.msra.mxu2 %v1202_v57  ;;  %v1615_v57 = vld [vmem:[#allocation5 + $0x144] sm:$0xf]  ;;  %v1319_v40 = vld [vmem:[#allocation5 + $0x198] sm:$0xf0]  ;;  %v1657_v41 = vld [vmem:[#allocation5 + $0x294] sm:$0xf] }
  0x51   :  { %790 = vmatpush.bf16.msrb.mxu3 %v1130_v63  ;;  %v1482_v63 = vor.u32 %v1665_v54, %v1479_v55  ;;  %v1282_v1 = vor.u32 %v1615_v57, %v1279_v59  ;;  %v1659_v27 = vld [vmem:[#allocation5 + $0x2a4] sm:$0xf]  ;;  %v1247_v46 = vld [vmem:[#allocation5 + $0x108] sm:$0xf0] }
  0x52   :  { %764 = vmatpush.bf16.msrb.mxu1 %v1446_v8  ;;  %v1613_v8 = vld [vmem:[#allocation5 + $0x134] sm:$0xf]  ;;  %v1458_v36 = vor.u32 %v1659_v27, %v1455_v28  ;;  %v1607_v45 = vld [vmem:[#allocation5 + $0x104] sm:$0xf]  ;;  %v1503_v50 = vld [vmem:[#allocation5 + $0x308] sm:$0xf0] }
  0x53   :  { %752 = vmatpush.bf16.msrb.mxu0 %v1374_v16  ;;  %v1274_v13 = vor.u32 %v1613_v8, %v1271_v9  ;;  %v1463_v16 = vld [vmem:[#allocation5 + $0x2b8] sm:$0xf0]  ;;  %v1639_v47 = vld [vmem:[#allocation5 + $0x204] sm:$0xf]  ;;  %v1250_v54 = vor.u32 %v1607_v45, %v1247_v46  ;;  %v1439_v60 = vld [vmem:[#allocation5 + $0x288] sm:$0xf0] }
  0x54   :  { %803 = vmatpush.bf16.msra.mxu2 %v1194_v12  ;;  %v1629_v12 = vld [vmem:[#allocation5 + $0x1b4] sm:$0xf]  ;;  %v1466_v23 = vor.u32 %v1661_v15, %v1463_v16  ;;  %v1623_v55 = vld [vmem:[#allocation5 + $0x184] sm:$0xf]  ;;  %v1678_v9 = vld [vmem:[#allocation8 + $0x28] sm:$0xff] }
  0x55   :  { %791 = vmatpush.bf16.msrb.mxu3 %v1122_v17  ;;  %v1655_v59 = vld [vmem:[#allocation5 + $0x284] sm:$0xf]  ;;  %v1674_v15 = vld [vmem:[#allocation8 + $0x8] sm:$0xff] }
  0x56   :  { %765 = vmatpush.bf16.msrb.mxu1 %v1438_v26  ;;  %753 = vmatmul.bf16.vlgmr.msrb.gmra.mxu0 %v1906_v30  ;;  %v1327_v26 = vld [vmem:[#allocation5 + $0x1a8] sm:$0xf0] }
  0x57   :  { %810 = vmatpush.bf16.msra.mxu0 %v1306_v21  ;;  %v1391_v21 = vld [vmem:[#allocation5 + $0x228] sm:$0xf0] }
  0x58   :  { %804 = vmatpush.bf16.msra.mxu2 %v1186_v31  ;;  %792 = vmatmul.bf16.vlgmr.msrb.gmra.mxu3 %v1892_v58  ;;  %v1474_v58 = vor.u32 %v1663_v5, %v1471_v6  ;;  %v1394_v29 = vor.u32 %v1643_v20, %v1391_v21  ;;  %v1609_v31 = vld [vmem:[#allocation5 + $0x114] sm:$0xf]  ;;  %v1679_v6 = vld [vmem:[#allocation8 + $0x30] sm:$0xff] }
  0x59   :  { %836 = vmatpush.bf16.msra.mxu3 %v1434_v22  ;;  %766 = vmatmul.bf16.vlgmr.msrb.gmra.mxu1 %v1908_v37  ;;  %v1338_v22 = vor.u32 %v1629_v12, %v1335_v14  ;;  %v1258_v39 = vor.u32 %v1609_v31, %v1255_v32  ;;  %v1673_v20 = vld [vmem:[#allocation8] sm:$0xff] }
  0x5a   :  { %823 = vmatpush.bf16.msra.mxu1 %v1370_v34  ;;  %v1383_v34 = vld [vmem:[#allocation5 + $0x218] sm:$0xf0] }
  0x5b   :  { %811 = vmatpush.bf16.msra.mxu0 %v1298_v38  ;;  %805 = vmatmul.bf16.vlgmr.msra.gmra.mxu2 %v1896_v4  ;;  %v1399_v4 = vld [vmem:[#allocation5 + $0x238] sm:$0xf0]  ;;  %v1625_v38 = vld [vmem:[#allocation5 + $0x194] sm:$0xf]  ;;  %v1386_v44 = vor.u32 %v1641_v33, %v1383_v34 }
  0x5c   :  { %849 = vmatpush.bf16.msrb.mxu2 %v1498_v35  ;;  %v1402_v17 = vor.u32 %v1645_v10, %v1399_v4  ;;  %v1330_v35 = vor.u32 %v1627_v24, %v1327_v26  ;;  %v1677_v4 = vld [vmem:[#allocation8 + $0x20] sm:$0xff] }
  0x5d   :  { %837 = vmatpush.bf16.msra.mxu3 %v1426_v42  ;;  %v1447_v42 = vld [vmem:[#allocation5 + $0x298] sm:$0xf0] }
  0x5e   :  { %824 = vmatpush.bf16.msra.mxu1 %v1362_v48  ;;  %v1375_v48 = vld [vmem:[#allocation5 + $0x208] sm:$0xf0]  ;;  %v1450_v53 = vor.u32 %v1657_v41, %v1447_v42  ;;  %v1685_v42 = vld [vmem:[#allocation8 + $0x60] sm:$0xff] }
  0x5f   :  { %812 = vmatpush.bf16.msra.mxu0 %v1290_v52  ;;  %v1322_v52 = vor.u32 %v1625_v38, %v1319_v40  ;;  %v1378_v57 = vor.u32 %v1639_v47, %v1375_v48  ;;  %v1686_v38 = vld [vmem:[#allocation8 + $0x68] sm:$0xff] }
  0x60   :  { %850 = vmatpush.bf16.msrb.mxu2 %v1490_v49  ;;  %v1671_v49 = vld [vmem:[#allocation5 + $0x304] sm:$0xf] }
  0x61   :  { %838 = vmatpush.bf16.msra.mxu3 %v1418_v56  ;;  %v1311_v56 = vld [vmem:[#allocation5 + $0x188] sm:$0xf0]  ;;  %v1506_v61 = vor.u32 %v1671_v49, %v1503_v50 }
  0x62   :  { %825 = vmatpush.bf16.msra.mxu1 %v1354_v62  ;;  %v1314_v62 = vor.u32 %v1623_v55, %v1311_v56  ;;  %v1684_v50 = vld [vmem:[#allocation8 + $0x58] sm:$0xff] }
  0x63   :  { %813 = vmatpush.bf16.msra.mxu0 %v1282_v1  ;;  %v1680_v1 = vld [vmem:[#allocation8 + $0x38] sm:$0xff] }
  0x64   :  { %851 = vmatpush.bf16.msrb.mxu2 %v1482_v63  ;;  %v1442_v63 = vor.u32 %v1655_v59, %v1439_v60  ;;  %v1683_v59 = vld [vmem:[#allocation8 + $0x50] sm:$0xff] }
  0x65   :  { %839 = vmatpush.bf16.msra.mxu3 %v1410_v7  ;;  %v193_v7 = vld [vmem:[#allocation7] sm:$0x3] }
  0x66   :  { %826 = vmatpush.bf16.msra.mxu1 %v1346_v11  ;;  %v195_v10 = vperm.slane %v193_v7, 0 }
  0x67   :  { %814 = vmatpush.bf16.msra.mxu0 %v1274_v13  ;;  %v1675_v13 = vld [vmem:[#allocation8 + $0x10] sm:$0xff] }
  0x68   :  { %852 = vmatpush.bf16.msrb.mxu2 %v1474_v58 }
  0x69   :  { %840 = vmatpush.bf16.msra.mxu3 %v1402_v17 }
  0x6a   :  { %827 = vmatpush.bf16.msra.mxu1 %v1338_v22 }
  0x6b   :  { %815 = vmatpush.bf16.msra.mxu0 %v1266_v25 }
  0x6c   :  { %853 = vmatpush.bf16.msrb.mxu2 %v1466_v23 }
  0x6d   :  { %841 = vmatpush.bf16.msra.mxu3 %v1394_v29  ;;  %v1688_v29 = vld [vmem:[#allocation8 + $0x78] sm:$0xff] }
  0x6e   :  { %828 = vmatpush.bf16.msra.mxu1 %v1330_v35  ;;  %v1687_v35 = vld [vmem:[#allocation8 + $0x70] sm:$0xff] }
  0x6f   :  { %816 = vmatpush.bf16.msra.mxu0 %v1258_v39 }
  0x70   :  { %854 = vmatpush.bf16.msrb.mxu2 %v1458_v36  ;;  %v196_v36 = vperm.slane %v193_v7, 1 }
  0x71   :  { %842 = vmatpush.bf16.msra.mxu3 %v1386_v44 }
  0x72   :  { %829 = vmatpush.bf16.msra.mxu1 %v1322_v52 }
  0x73   :  { %817 = vmatpush.bf16.msra.mxu0 %v1250_v54 }
  0x74   :  { %855 = vmatpush.bf16.msrb.mxu2 %v1450_v53 }
  0x75   :  { %843 = vmatpush.bf16.msra.mxu3 %v1378_v57 }
  0x76   :  { %830 = vmatpush.bf16.msra.mxu1 %v1314_v62  ;;  %818 = vmatmul.bf16.vlgmr.msra.gmra.mxu0 %v1890_v51  ;;  %v1682_v62 = vld [vmem:[#allocation8 + $0x48] sm:$0xff] }
  0x77   :  { %869 = vmatpush.bf16.msrb.mxu0 %v1506_v61 }
  0x78   :  { %844 = vmatmul.bf16.vlgmr.msra.gmra.mxu3 %v1906_v30  ;;  %856 = vmatpush.bf16.msrb.mxu2 %v1442_v63 }
  0x79   :  { %831 = vmatmul.bf16.vlgmr.msra.gmra.mxu1 %v1894_v3  ;;  %1060 = vmatpush.bf16.msrb.mxu3 %v1688_v29 }
  0x7a   :  { %1047 = vmatpush.bf16.msrb.mxu1 %v1680_v1 }
  0x7b   :  { %857 = vmatmul.bf16.vlgmr.msrb.gmra.mxu2 %v1908_v37 }
  0x7d   :  { %1061 = vmatpush.bf16.msrb.mxu3 %v1687_v35 }
  0x7e   :  { %1048 = vmatpush.bf16.msrb.mxu1 %v1679_v6  ;;  %v1681_v6 = vld [vmem:[#allocation8 + $0x40] sm:$0xff] }
  0x81   :  { %1062 = vmatpush.bf16.msrb.mxu3 %v1686_v38 }
  0x82   :  { %1049 = vmatpush.bf16.msrb.mxu1 %v1678_v9 }
  0x85   :  { %1063 = vmatpush.bf16.msrb.mxu3 %v1685_v42 }
  0x86   :  { %1508 = vmatmul.msk.bf16.vlgmr.msrb.gmra.mxu0 %vm689_vm0, %v1902_v43  ;;  %1050 = vmatpush.bf16.msrb.mxu1 %v1677_v4  ;;  %v1676_v43 = vld [vmem:[#allocation8 + $0x18] sm:$0xff] }
  0x89   :  { %1064 = vmatpush.bf16.msrb.mxu3 %v1684_v50 }
  0x8a   :  { %1051 = vmatpush.bf16.msrb.mxu1 %v1676_v43 }
  0x8d   :  { %1065 = vmatpush.bf16.msrb.mxu3 %v1683_v59 }
  0x8e   :  { %1052 = vmatpush.bf16.msrb.mxu1 %v1675_v13 }
  0x91   :  { %1066 = vmatpush.bf16.msrb.mxu3 %v1682_v62 }
  0x92   :  { %1053 = vmatpush.bf16.msrb.mxu1 %v1674_v15 }
  0x95   :  { %1067 = vmatpush.bf16.msrb.mxu3 %v1681_v6 }
  0x96   :  { %1054 = vmatpush.bf16.msrb.mxu1 %v1673_v20 }
  0xb3   :  { %v702_v0 = vpop.f32.mrf.mxu0 }
  0xb4   :  { %v703_v37 = vadd.f32 %v702_v0, %v195_v10 }
  0xb6   :  { %v715_v2 = vpop.f32.mrf.mxu1 }
  0xb7   :  { %v716_v58 = vadd.f32 %v715_v2, %v703_v37 }
  0xba   :  { %v728_v5 = vpop.f32.mrf.mxu2 }
  0xbb   :  { %v741_v8 = vpop.f32.mrf.mxu3  ;;  %v704_v51 = vpop.f32.mrf.mxu0  ;;  %v729_v14 = vadd.f32 %v728_v5, %v716_v58 }
  0xbd   :  { %v742_v16 = vadd.f32 %v741_v8, %v729_v14 }
  0xbe   :  { %v717_v30 = vpop.f32.mrf.mxu1 }
  0xc2   :  { %v730_v3 = vpop.f32.mrf.mxu2 }
  0xc3   :  { %v743_v11 = vpop.f32.mrf.mxu3 }
  0xca   :  { %v780_v12 = vpop.f32.mrf.mxu2 }
  0xd2   :  { %v782_v19 = vpop.f32.mrf.mxu2 }
  0xd3   :  { %v754_v17 = vpop.f32.mrf.mxu0 }
  0xd4   :  { %v755_v18 = vadd.f32 %v754_v17, %v742_v16 }
  0xd6   :  { %v767_v21 = vpop.f32.mrf.mxu1 }
  0xd7   :  { %v768_v22 = vadd.f32 %v767_v21, %v755_v18 }
  0xd9   :  { %v781_v23 = vadd.f32 %v780_v12, %v768_v22  ;;  %v1698_v22 = vld [vmem:[%s1930_s4] ss:$0 sm:$0xff]  ;;  %s1847_s4 = smov [#allocation10]  }
  0xda   :  { %s1101_s15 = sshll.u32 %s1847_s4, 4  ;;  %s1102_s15 = int_to_ptr.vmem [resolvable:$true] %s1101_s15 }
  0xdb   :  { %v1509_v24 = vmul.f32 -1.442695, %v781_v23  ;;  %v756_v25 = vpop.f32.mrf.mxu0  ;;  %v793_v27 = vpop.f32.mrf.mxu3 }
  0xdc   :  { %v794_v41 = vadd.f32 %v793_v27, %v196_v36 }
  0xdd   :  { %1699 = vpow2.f32 %v1509_v24 }
  0xde   :  { %v806_v26 = vpop.f32.mrf.mxu2  ;;  %v769_v28 = vpop.f32.mrf.mxu1 }
  0xdf   :  { %v807_v49 = vadd.f32 %v806_v26, %v794_v41 }
  0xe3   :  { %v1700_v31 = vpop.eup %1699  ;;  %v795_v34 = vpop.f32.mrf.mxu3 }
  0xe4   :  { %v881_v32 = vadd.f32 1.0, %v1700_v31 }
  0xe6   :  { %v808_v33 = vpop.f32.mrf.mxu2  ;;  %1701 = vrcp.f32 %v881_v32  ;;  %v894_v45 = vand.u32 2147483648, %v881_v32  ;;  %v892_v48 = vand.u32 2147483647, %v881_v32  ;;  %vm888_vm2 = vweird.f32 %v881_v32 }
  0xe8   :  { %v895_v54 = vor.u32 1.1754944e-38, %v894_v45  ;;  %vm893_vm4 = vcmp.eq.f32.partialorder %v892_v48, 8.507059e+37 }
  0xec   :  { %v1702_v39 = vpop.eup %1701 }
  0xed   :  { %v884_v40 = vmul.f32 %v1702_v39, %v881_v32  ;;  %vm889_vm1 = vweird.f32 %v1702_v39 }
  0xee   :  { %vm890_vm3 = vmor %vm888_vm2, %vm889_vm1 }
  0xef   :  { %v885_v44 = vsub.f32 1.0, %v884_v40 }
  0xf1   :  { %v886_v47 = vmul.f32 %v1702_v39, %v885_v44 }
  0xf3   :  { %v819_v46 = vpop.f32.mrf.mxu0  ;;  %v887_v52 = vadd.f32 %v1702_v39, %v886_v47 }
  0xf4   :  { %v820_v56 = vadd.f32 %v819_v46, %v807_v49 }
  0xf5   :  { %v891_v55 = vsel %vm890_vm3, %v1702_v39, %v887_v52 }
  0xf6   :  { %v832_v53 = vpop.f32.mrf.mxu1  ;;  %v896_v57 = vsel %vm893_vm4, %v895_v54, %v891_v55 }
  0xf7   :  { %v913_v60 = vpack.c.bf16 %v896_v57, %v896_v57  ;;  %v833_v0 = vadd.f32 %v832_v53, %v820_v56 }
  0xf9   :  { %1055 = vmatmul.bf16.vlgmr.msrb.gmra.mxu1 %v913_v60 }
  0xfb   :  { %v845_v61 = vpop.f32.mrf.mxu3  ;;  %v821_v63 = vpop.f32.mrf.mxu0 }
  0xfc   :  { %v846_v2 = vadd.f32 %v845_v61, %v833_v0 }
  0xfe   :  { %v858_v1 = vpop.f32.mrf.mxu2  ;;  %v834_v5 = vpop.f32.mrf.mxu1 }
  0xff   :  { %v859_v7 = vadd.f32 %v858_v1, %v846_v2 }
 0x103   :  { %v847_v8 = vpop.f32.mrf.mxu3  ;;  %v871_v51 = vpop.f32.mrf.mxu0 }
 0x104   :  { %v872_v9 = vadd.f32 %v871_v51, %v859_v7 }
 0x106   :  { %v860_v30 = vpop.f32.mrf.mxu2  ;;  %v1510_v10 = vmul.f32 -1.442695, %v872_v9 }
 0x108   :  { %1703 = vpow2.f32 %v1510_v10 }
 0x10b   :  { %v873_v3 = vpop.f32.mrf.mxu0 }
 0x10e   :  { %v1704_v4 = vpop.eup %1703 }
 0x10f   :  { %v882_v37 = vadd.f32 1.0, %v1704_v4 }
 0x111   :  { %1705 = vrcp.f32 %v882_v37  ;;  %v909_v12 = vand.u32 2147483648, %v882_v37  ;;  %v907_v14 = vand.u32 2147483647, %v882_v37  ;;  %vm903_vm6 = vweird.f32 %v882_v37 }
 0x113   :  { %v910_v16 = vor.u32 1.1754944e-38, %v909_v12  ;;  %vm908_vm8 = vcmp.eq.f32.partialorder %v907_v14, 8.507059e+37 }
 0x117   :  { %v1706_v11 = vpop.eup %1705 }
 0x118   :  { %v899_v43 = vmul.f32 %v1706_v11, %v882_v37  ;;  %vm904_vm5 = vweird.f32 %v1706_v11 }
 0x119   :  { %vm905_vm7 = vmor %vm903_vm6, %vm904_vm5 }
 0x11a   :  { %v900_v58 = vsub.f32 1.0, %v899_v43 }
 0x11c   :  { %v901_v13 = vmul.f32 %v1706_v11, %v900_v58 }
 0x11e   :  { %v902_v15 = vadd.f32 %v1706_v11, %v901_v13 }
 0x120   :  { %v906_v17 = vsel %vm905_vm7, %v1706_v11, %v902_v15 }
 0x121   :  { %v911_v18 = vsel %vm908_vm8, %v910_v16, %v906_v17 }
 0x122   :  { %v914_v19 = vpack.c.bf16 %v911_v18, %v911_v18 }
 0x124   :  { %1068 = vmatmul.bf16.vlgmr.msrb.gmra.mxu3 %v914_v19 }
 0x176   :  { %v1056_v20 = vpop.f32.mrf.mxu1 }
 0x177   :  { %v1057_v23 = vadd.f32 %v1698_v22, %v1056_v20 }
 0x17e   :  { %v1058_v21 = vpop.f32.mrf.mxu1 }
 0x1a7   :  { %v1069_v24 = vpop.f32.mrf.mxu3 }
 0x1a8   :  { %v1070_v25 = vadd.f32 %v1069_v24, %v1057_v23 }
 0x1aa   :  { %1073 = vmax.xlane.f32.xlu0 %v1070_v25 }
 0x1af   :  { %v1071_v26 = vpop.f32.mrf.mxu3 }
 0x21d   :  { %v1074_v27 = vpop.xlane.xlu0 %1073 }
 0x21e   :  { %v1075_v28 = vsub.f32 %v1070_v25, %v1074_v27 }
 0x220   :  { %v1076_v29 = vmul.f32 1.442695, %v1075_v28 }
 0x222   :  { %1707 = vpow2.f32 %v1076_v29 }
 0x228   :  { %v1708_v31 = vpop.eup %1707 }
 0x229   :  { %1078 = vadd.xlane.f32.xlu0 %v1708_v31 }
 0x29c   :  { %v1079_v32 = vpop.xlane.xlu0 %1078 }
 0x29d   :  { %1709 = vrcp.f32 %v1079_v32  ;;  %v1091_v36 = vand.u32 2147483648, %v1079_v32  ;;  %v1089_v39 = vand.u32 2147483647, %v1079_v32  ;;  %vm1085_vm10 = vweird.f32 %v1079_v32 }
 0x29f   :  { %v1092_v41 = vor.u32 1.1754944e-38, %v1091_v36  ;;  %vm1090_vm12 = vcmp.eq.f32.partialorder %v1089_v39, 8.507059e+37 }
 0x2a3   :  { %v1710_v33 = vpop.eup %1709 }
 0x2a4   :  { %v1081_v34 = vmul.f32 %v1710_v33, %v1079_v32  ;;  %vm1086_vm9 = vweird.f32 %v1710_v33 }
 0x2a5   :  { %vm1087_vm11 = vmor %vm1085_vm10, %vm1086_vm9 }
 0x2a6   :  { %v1082_v35 = vsub.f32 1.0, %v1081_v34 }
 0x2a8   :  { %v1083_v38 = vmul.f32 %v1710_v33, %v1082_v35 }
 0x2aa   :  { %v1084_v40 = vadd.f32 %v1710_v33, %v1083_v38 }
 0x2ac   :  { %v1088_v42 = vsel %vm1087_vm11, %v1710_v33, %v1084_v40 }
 0x2ad   :  { %v1093_v44 = vsel %vm1090_vm12, %v1092_v41, %v1088_v42 }
 0x2ae   :  { %v1094_v45 = vmul.f32 %v1708_v31, %v1093_v44 }
 0x2b0   :  { %1095 = vst [vmem:[#allocation10] sm:$0xff] %v1094_v45 }
 0x2b1   :  { %1106 = dma.vmem_to_hbm [thread:$0]  %s1102_s15, 128, %s1104_s18, [#allocation4]  }
 0x2b2   :  { %1837 = dma.done.wait [#allocation4], 128  }
 0x2b3   :  { %1838 = vsyncadd [#allocation4], 4294967168 }
 0x2b4   :  { %1111 = vsyncpa [#allocation3], 1 }
 0x2b5   :  { %1112 = vsyncpa [#allocation6], 1 }
 0x2b6   :  { %1113 = vsyncpa [#allocation9], 1 }
 0x2b7   :  { %1114 = vsyncpa [#allocation4], 1 }

</bundles_post_ra>
